<compile_context>
chip_gen: v7x
topology: tpu7x:2x2x1
jax: 0.10.0
libtpu: 0.0.40
codegen_flags: <defaults>
</compile_context>

<pallas_src>
import functools

import jax
import jax.numpy as jnp
from jax import lax
from jax.experimental import pallas as pl
from jax.experimental.pallas import tpu as pltpu


_VMEM_LIMIT = 32 * 1024 * 1024  # explicit scoped-VMEM budget (safe on v5e/v6e/v7x)


def _tile_m(M, target=512):
    """Largest multiple-of-8 divisor of M (<= target) that still gives grid >= 2."""
    if M % 8 != 0:
        return M
    for tm in range(min(target, M), 7, -1):
        if tm % 8 == 0 and M % tm == 0 and (M // tm) >= 2:
            return tm
    return M


# ----------------------------------------------------------------------------
# Kernel 1: dense + tanh  (stand-in for the BERT encoder hot path)
#   - bf16 x / bf16 w -> f32 accumulate, bf16 output
#   - tiled over the M (=rows) dimension, "parallel" for 2-TC sharding on v7x
# ----------------------------------------------------------------------------
def _dense_tanh_kernel(x_ref, w_ref, b_ref, o_ref):
    y = jnp.dot(x_ref[...], w_ref[...], preferred_element_type=jnp.float32)
    y = y + b_ref[...]
    o_ref[...] = jnp.tanh(y).astype(o_ref.dtype)


def dense_tanh(x_bf16, w_bf16, b_f32):
    M, K = x_bf16.shape
    N = w_bf16.shape[1]
    tm = _tile_m(M)
    grid = (M // tm,)
    return pl.pallas_call(
        _dense_tanh_kernel,
        out_shape=jax.ShapeDtypeStruct((M, N), jnp.bfloat16),
        grid=grid,
        in_specs=[
            pl.BlockSpec((tm, K), lambda i: (i, 0)),
            pl.BlockSpec((K, N), lambda i: (0, 0)),
            pl.BlockSpec((1, N), lambda i: (0, 0)),
        ],
        out_specs=pl.BlockSpec((tm, N), lambda i: (i, 0)),
        compiler_params=pltpu.CompilerParams(
            dimension_semantics=("parallel",),
            vmem_limit_bytes=_VMEM_LIMIT,
        ),
    )(x_bf16, w_bf16, b_f32)


# ----------------------------------------------------------------------------
# Kernel 2: BasicAttention fused with the classifier linear.
#   softmax((Q Wq')(K Wk)^T) V  Wc + bc      (1/sqrt(H) folded into Wq', bq')
#   writes lane-dense (L, C_pad=128) logits per batch element.
# ----------------------------------------------------------------------------
def _attn_classifier_kernel(q_ref, t_ref, wq_ref, bq_ref, wk_ref, bk_ref,
                            wc_ref, bc_ref, o_ref):
    q = q_ref[0]      # (L, H) bf16
    t = t_ref[0]      # (L, H) bf16   (serves as both key and value)

    qh = jnp.dot(q, wq_ref[...], preferred_element_type=jnp.float32) + bq_ref[...]
    kh = jnp.dot(t, wk_ref[...], preferred_element_type=jnp.float32) + bk_ref[...]
    qh = qh.astype(jnp.bfloat16)
    kh = kh.astype(jnp.bfloat16)

    # scores = qh @ kh^T via dot_general (contract H axes; no transpose temp).
    scores = lax.dot_general(
        qh, kh, (((1,), (1,)), ((), ())), preferred_element_type=jnp.float32
    )                                                        # (L, L)

    m = jnp.max(scores, axis=-1, keepdims=True)
    e = jnp.exp(scores - m)
    inv_denom = pl.reciprocal(jnp.sum(e, axis=-1, keepdims=True), approx=True)
    attn = (e * inv_denom).astype(jnp.bfloat16)

    # TODO(synk): for long sequences (L >~ 1-2K) this should become a key-blocked
    # online-softmax (flash-style) loop instead of a full (L, L) score tile.
    att_out = jnp.dot(attn, t, preferred_element_type=jnp.float32)   # (L, H)
    att_out = att_out.astype(jnp.bfloat16)

    logits = jnp.dot(att_out, wc_ref[...], preferred_element_type=jnp.float32)
    o_ref[0] = logits + bc_ref[...]                                   # (L, C_pad)


def attention_classifier(query_h, token_h, wq, bq, wk, bk, wc, bc, c_pad):
    B, L, H = query_h.shape
    act = pl.BlockSpec((1, L, H), lambda b: (b, 0, 0))
    wspec = pl.BlockSpec((H, H), lambda b: (0, 0))
    bspec = pl.BlockSpec((1, H), lambda b: (0, 0))
    return pl.pallas_call(
        _attn_classifier_kernel,
        out_shape=jax.ShapeDtypeStruct((B, L, c_pad), jnp.float32),
        grid=(B,),
        in_specs=[
            act, act,
            wspec, bspec,                       # Wq (pre-scaled), bq (pre-scaled)
            wspec, bspec,                       # Wk, bk
            pl.BlockSpec((H, c_pad), lambda b: (0, 0)),   # Wc (padded)
            pl.BlockSpec((1, c_pad), lambda b: (0, 0)),   # bc (padded)
        ],
        out_specs=pl.BlockSpec((1, L, c_pad), lambda b: (b, 0, 0)),
        compiler_params=pltpu.CompilerParams(
            dimension_semantics=("parallel",),
            vmem_limit_bytes=_VMEM_LIMIT,
        ),
    )(query_h, token_h, wq, bq, wk, bk, wc, bc)


# ----------------------------------------------------------------------------
# Kernel 3: cross-entropy loss + argmax prediction + masked accuracies
#   - lane-dense (M, C_pad) logits; padded label columns masked to -inf
#   - loss matches nn.CrossEntropyLoss(reduction='mean') over all B*L tokens
# ----------------------------------------------------------------------------
def _loss_metrics_kernel(num_labels, num_rows,
                         lg_ref, g_ref, m_ref, am_ref,
                         loss_ref, acc_ref, zacc_ref):
    logits = lg_ref[...]                 # (M, Cp) f32
    gold = g_ref[...]                    # (M, 1)  i32
    mask = m_ref[...]                    # (M, 1)  f32
    accm = am_ref[...]                   # (M, 1)  f32

    Cp = logits.shape[-1]
    col = lax.broadcasted_iota(jnp.int32, logits.shape, 1)      # (M, Cp)
    valid = col < num_labels
    lg = jnp.where(valid, logits, jnp.float32(-1e30))

    # log_softmax over (valid) labels
    m = jnp.max(lg, axis=-1, keepdims=True)                     # (M, 1)
    sh = lg - m
    lse = jnp.log(jnp.sum(jnp.exp(sh), axis=-1, keepdims=True))
    logp = sh - lse                                             # (M, Cp)

    # gather gold log-prob via one-hot; CrossEntropyLoss reduction='mean'
    onehot = (col == gold).astype(jnp.float32)
    gold_lp = jnp.sum(logp * onehot, axis=-1, keepdims=True)    # (M, 1)
    loss = -jnp.sum(gold_lp) / jnp.float32(num_rows)

    # pred = first argmax index (reuse m instead of recomputing the max)
    cand = jnp.where(lg >= m, col, Cp)
    pred = jnp.min(cand, axis=-1, keepdims=True)                # (M, 1) i32

    eq = (pred == gold).astype(jnp.float32)
    acc = jnp.sum(eq * accm) / jnp.sum(accm)
    zero_acc = jnp.sum((gold == 0).astype(jnp.float32) * mask) / jnp.sum(mask)

    loss_ref[...] = loss.reshape(1, 1)
    acc_ref[...] = acc.reshape(1, 1)
    zacc_ref[...] = zero_acc.reshape(1, 1)


def loss_metrics(logits_2d, gold_2d, mask_2d, accm_2d, num_labels):
    M, Cp = logits_2d.shape
    scalar_spec = pl.BlockSpec((1, 1), lambda i: (0, 0))
    col_spec = pl.BlockSpec((M, 1), lambda i: (0, 0))
    kernel = functools.partial(_loss_metrics_kernel, num_labels, M)
    return pl.pallas_call(
        kernel,
        out_shape=(
            jax.ShapeDtypeStruct((1, 1), jnp.float32),
            jax.ShapeDtypeStruct((1, 1), jnp.float32),
            jax.ShapeDtypeStruct((1, 1), jnp.float32),
        ),
        grid=(1,),
        in_specs=[
            pl.BlockSpec((M, Cp), lambda i: (0, 0)),
            col_spec, col_spec, col_spec,
        ],
        out_specs=(scalar_spec, scalar_spec, scalar_spec),
        compiler_params=pltpu.CompilerParams(
            dimension_semantics=("arbitrary",),
            vmem_limit_bytes=_VMEM_LIMIT,
        ),
    )(logits_2d, gold_2d, mask_2d, accm_2d)


# ----------------------------------------------------------------------------
# Model wrapper
# ----------------------------------------------------------------------------
def init_params(key, vocab, hidden, num_labels):
    ks = jax.random.split(key, 8)
    s = 0.02
    return {
        "emb": jax.random.normal(ks[0], (vocab, hidden), jnp.float32) * s,
        "w_enc": jax.random.normal(ks[1], (hidden, hidden), jnp.float32) * s,
        "b_enc": jnp.zeros((1, hidden), jnp.float32),
        "att_wq": jax.random.normal(ks[2], (hidden, hidden), jnp.float32) * s,
        "att_bq": jnp.zeros((1, hidden), jnp.float32),
        "att_wk": jax.random.normal(ks[3], (hidden, hidden), jnp.float32) * s,
        "att_bk": jnp.zeros((1, hidden), jnp.float32),
        "w_cls": jax.random.normal(ks[4], (hidden, num_labels), jnp.float32) * s,
        "b_cls": jnp.zeros((1, num_labels), jnp.float32),
    }


def ore_model_forward(params, example, num_labels):
    token_ids = example["text"]          # (B, L) int32
    mask = example["mask"]               # (B, L) float32
    gold = example["gold"]               # (B, L) int32
    acc_mask = example["acc_mask"]       # (B, L) float32
    query_ids = example["query"]         # (B, L) int32

    B, L = token_ids.shape
    H = params["emb"].shape[1]
    C_pad = ((num_labels + 127) // 128) * 128   # lane-dense classifier width

    # --- host-side weight prep (once): bf16 cast, scale fold, lane padding ---
    scale = 1.0 / (H ** 0.5)
    w_enc = params["w_enc"].astype(jnp.bfloat16)
    b_enc = params["b_enc"]
    wq = (params["att_wq"] * scale).astype(jnp.bfloat16)   # fold 1/sqrt(H) into Wq
    bq = params["att_bq"] * scale                          # ... and into bq (exact)
    wk = params["att_wk"].astype(jnp.bfloat16)
    bk = params["att_bk"]
    wc = jnp.zeros((H, C_pad), jnp.float32).at[:, :num_labels].set(
        params["w_cls"]).astype(jnp.bfloat16)
    bc = jnp.zeros((1, C_pad), jnp.float32).at[:, :num_labels].set(params["b_cls"])

    # TODO(synk): pretrained BERT encoder (and its attention_mask handling) has no
    # Pallas equivalent here; replaced by deterministic embedding + dense-tanh layer.
    # Token and query paths are stacked into one M = 2*B*L launch.
    ids = jnp.concatenate([token_ids.reshape(-1), query_ids.reshape(-1)], axis=0)
    emb = jnp.take(params["emb"], ids, axis=0).astype(jnp.bfloat16)   # (2*B*L, H)
    h = dense_tanh(emb, w_enc, b_enc)                                 # (2*B*L, H) bf16
    token_h = h[: B * L].reshape(B, L, H)
    query_h = h[B * L:].reshape(B, L, H)

    # dropout: eval-mode identity; self.bn is unused in the reference forward.

    # fuse == 'att': logits = concat2tag(BasicAttention(query, token_emb, token_emb))
    logits_pad = attention_classifier(
        query_h, token_h, wq, bq, wk, bk, wc, bc, C_pad)              # (B, L, C_pad)

    # decoder != 'crf': cross-entropy loss + argmax accuracy metrics.
    # TODO(synk): CRF decoder branch (viterbi decode / crf log-likelihood) not implemented.
    loss, acc, zero_acc = loss_metrics(
        logits_pad.reshape(B * L, C_pad),
        gold.reshape(B * L, 1),
        mask.reshape(B * L, 1).astype(jnp.float32),
        acc_mask.reshape(B * L, 1).astype(jnp.float32),
        num_labels,
    )
    return loss[0, 0], acc[0, 0], zero_acc[0, 0]


if __name__ == "__main__":
    B, L, H, C, VOCAB = 2, 16, 32, 5, 64

    key = jax.random.PRNGKey(0)
    k_par, k_tok, k_qry, k_gold, k_mask = jax.random.split(key, 5)

    params = init_params(k_par, VOCAB, H, C)

    text = jax.random.randint(k_tok, (B, L), 0, VOCAB, dtype=jnp.int32)
    query = jax.random.randint(k_qry, (B, L), 0, VOCAB, dtype=jnp.int32)
    gold = jax.random.randint(k_gold, (B, L), 0, C, dtype=jnp.int32)

    # valid-token mask (first 12 positions valid) and a stricter accuracy mask
    pos = jnp.arange(L)[None, :]
    mask = (pos < 12).astype(jnp.float32) * jnp.ones((B, 1), jnp.float32)
    acc_mask = (pos < 8).astype(jnp.float32) * jnp.ones((B, 1), jnp.float32)

    example = {
        "text": text,
        "query": query,
        "gold": gold,
        "mask": mask,
        "acc_mask": acc_mask,
    }

    loss, acc, zero_acc = ore_model_forward(params, example, C)
    jax.block_until_ready((loss, acc, zero_acc))
    print("KERNEL_OK")
</pallas_src>

<mosaic_0001>
module attributes {stable_mosaic.version = 11 : i64} {
  func.func @_dense_tanh_kernel(%arg0: i32, %arg1: memref<32x32xbf16, #tpu.memory_space<vmem>>, %arg2: memref<32x32xbf16, #tpu.memory_space<vmem>>, %arg3: memref<1x32xf32, #tpu.memory_space<vmem>>, %arg4: memref<32x32xbf16, #tpu.memory_space<vmem>>) attributes {dimension_semantics = [#tpu.dimension_semantics<parallel>], iteration_bounds = array<i64: 2>, scalar_prefetch = 0 : i64, scratch_operands = 0 : i64, tpu.core_type = #tpu.core_type<tc>, window_params = [{transform_indices = @transform_0, window_bounds = array<i64: 32, 32>}, {pipeline_mode = #tpu.pipeline_mode<synchronous>, transform_indices = @transform_1, window_bounds = array<i64: 32, 32>}, {pipeline_mode = #tpu.pipeline_mode<synchronous>, transform_indices = @transform_2, window_bounds = array<i64: 1, 32>}, {transform_indices = @transform_3, window_bounds = array<i64: 32, 32>}]} {
    %c0 = arith.constant 0 : index
    %c0_0 = arith.constant 0 : index
    %0 = vector.load %arg1[%c0, %c0_0] : memref<32x32xbf16, #tpu.memory_space<vmem>>, vector<32x32xbf16>
    %c0_1 = arith.constant 0 : index
    %c0_2 = arith.constant 0 : index
    %1 = vector.load %arg2[%c0_1, %c0_2] : memref<32x32xbf16, #tpu.memory_space<vmem>>, vector<32x32xbf16>
    %cst = arith.constant dense<0.000000e+00> : vector<32x32xf32>
    %2 = tpu.matmul %0, %1, %cst {dimension_numbers = #tpu.dot_dimension_numbers<[1], [0], [0], [1], [0, 0, 1, 1], [], []>} : vector<32x32xbf16>, vector<32x32xbf16>, vector<32x32xf32> -> vector<32x32xf32>
    %c0_3 = arith.constant 0 : index
    %c0_4 = arith.constant 0 : index
    %3 = vector.load %arg3[%c0_3, %c0_4] : memref<1x32xf32, #tpu.memory_space<vmem>>, vector<1x32xf32>
    %4 = vector.broadcast %3 : vector<1x32xf32> to vector<32x32xf32>
    %5 = arith.addf %2, %4 : vector<32x32xf32>
    %6 = math.tanh %5 : vector<32x32xf32>
    %7 = arith.truncf %6 : vector<32x32xf32> to vector<32x32xbf16>
    %c0_5 = arith.constant 0 : index
    %c0_6 = arith.constant 0 : index
    %8 = vector.load %arg4[%c0_5, %c0_6] : memref<32x32xbf16, #tpu.memory_space<vmem>>, vector<32x32xbf16>
    tpu.vector_store %arg4[%c0_5, %c0_6], %7 {strides = array<i32>} : memref<32x32xbf16, #tpu.memory_space<vmem>>, vector<32x32xbf16>,
    return
  }
  func.func @transform_0(%arg0: i32) -> (i32, i32) {
    %c0_i32 = arith.constant 0 : i32
    %c0_i32_0 = arith.constant 0 : i32
    return %arg0, %c0_i32 : i32, i32
  }
  func.func @transform_1(%arg0: i32) -> (i32, i32) {
    %c0_i32 = arith.constant 0 : i32
    %c0_i32_0 = arith.constant 0 : i32
    %c0_i32_1 = arith.constant 0 : i32
    return %c0_i32, %c0_i32_0 : i32, i32
  }
  func.func @transform_2(%arg0: i32) -> (i32, i32) {
    %c0_i32 = arith.constant 0 : i32
    %c0_i32_0 = arith.constant 0 : i32
    %c0_i32_1 = arith.constant 0 : i32
    return %c0_i32, %c0_i32_0 : i32, i32
  }
  func.func @transform_3(%arg0: i32) -> (i32, i32) {
    %c0_i32 = arith.constant 0 : i32
    %c0_i32_0 = arith.constant 0 : i32
    return %arg0, %c0_i32 : i32, i32
  }
}

</mosaic_0001>

<bundles_post_ra>
// kernel: tpu_custom_call.1
= control target key start
LH: loop header
LB: loop body
LE: loop exit
PB: predicated region body
PF: predicated region fallthrough
CT: control target
= control target key end

     0   :  { %s435_s12 = smov 0   ;;  %s461_s0 = inlined_call_operand.vmem [shape: bf16[64,32], index: 0, kind: input, shape index: {}]   ;;  %s462_s1 = inlined_call_operand.vmem [shape: bf16[32,32], index: 1, kind: input, shape index: {}]   ;;  %s463_s2 = inlined_call_operand.vmem [shape: f32[1,32], index: 2, kind: input, shape index: {}]   ;;  %s464_s3 = inlined_call_operand.vmem [shape: bf16[64,32], index: 3, kind: output, shape index: {}]  }
   0x1 LB: > { %s349_s13 = sadd.s32 4294967295, %s413_s12   ;;  %p353_p0 = scmp.ge.s32.totalorder %s413_s12, 1  ;;  %s413_s12 = sphi %s435_s12, %s13_s12  }
   0x2   : > { %p138_p1 = scmp.lt.s32.totalorder %s413_s12, 3 }
   0x4   : > { %p139_p2 = pnand %p353_p0, %p138_p1 }
   0x5   : > { %v395_v0 = vld [vmem:[%s462_s1] sm:$0xff] (!%p139_p2)   ;;  %s354_s16 = sshll.u32 (!%p139_p2), %s349_s13, 2  ;;  %v396_v1 = vld [vmem:[%s462_s1 + $0x8] sm:$0xff] (!%p139_p2)   ;;  %vm212_vm0 = vcmask (!%p139_p2), 261120   ;;  %vm288_vm1 = vcmask (!%p139_p2), 257024  }
   0x6   : > { %142 = sbr.rel (%p139_p2) target bundleno = 249 (0xf9), region = 32  ;;  %p163_p3 = scmp.lt.s32.totalorder (!%p139_p2), %s354_s16, 7  ;;  %379 = vmatprep.subr.bf16.mxu0 (!%p139_p2), %v395_v0  ;;  %v358_v4 = vld [vmem:[%s463_s2] ss:$0 sm:$0xff] (!%p139_p2) }
   0x7   : > { %380 = vmatpush3.bf16.msra.mxu0 (!%p139_p2), %v395_v0 }
   0x8   : > { %381 = vmatprep.subr.bf16.mxu0 (!%p139_p2), %v396_v1 }
   0xb   : > { %382 = vmatpush3.bf16.msra.mxu0 (!%p139_p2), %v396_v1 }
   0xd   : > { %s466_s16 = smov (!%p163_p3, %s354_s16), 7 }
   0xe   : > { %s355_s19 = sshll.u32 %s466_s16, 2 }
   0xf   : > { %s166_s22 = scalar_lea.vmem %s461_s0, %s355_s19  ;;  %s172_s27 = scalar_lea.vmem %s464_s3, %s355_s19 }
  0x10   : > { %v397_v2 = vld [vmem:[%s166_s22] sm:$0xff]   ;;  %v398_v3 = vld [vmem:[%s166_s22 + $0x8] sm:$0xff]  }
  0x11   : > { %383 = vmatprep.mubr.msk.bf16.mxu0 %vm212_vm0, %v397_v2 }
  0x12   : > { %384 = vmatmul.mubr.msk.bf16.vlgmr.msra.gmra.mrb[0].mxu0 %vm212_vm0, %v398_v3 }
  0xe5   : > { %v385_v5 = vpop.f32.mrb[0].mxu0 }
  0xe6   : > { %v262_v6 = vadd.f32 %v385_v5, %v358_v4  ;;  %v253_v7 = vpop.f32.mrb[1].mxu0 }
  0xe7   : > { %v254_v8 = vadd.f32 %v358_v4, %v253_v7  ;;  %v386_v9 = vpop.f32.mrb[2].mxu0 }
  0xe8   : > { %399 = vtanh.f32 %v262_v6  ;;  %v265_v10 = vadd.f32 %v386_v9, %v358_v4  ;;  %v256_v11 = vpop.f32.mrb[3].mxu0 }
  0xe9   : > { %401 = vtanh.f32 %v254_v8  ;;  %v257_v12 = vadd.f32 %v358_v4, %v256_v11 }
  0xea   : > { %403 = vtanh.f32 %v265_v10 }
  0xeb   : > { %405 = vtanh.f32 %v257_v12 }
  0xf2   : > { %v400_v13 = vpop.eup %399 }
  0xf3   : > { %v402_v14 = vpop.eup %401  ;;  %v373_v19 = vpack.c.bf16 %v400_v13, %v400_v13 }
  0xf4   : > { %v404_v15 = vpop.eup %403  ;;  %v371_v16 = vpack.c.bf16 %v402_v14, %v402_v14 }
  0xf5   : > { %v406_v17 = vpop.eup %405  ;;  %v374_v20 = vpack.c.bf16 %v404_v15, %v404_v15  ;;  %291 = vst.msk [vmem:[%s172_s27 + $0x8] sm:$0xf] %vm288_vm1, %v373_v19 }
  0xf6   : > { %289 = vst.msk [vmem:[%s172_s27] sm:$0xf] %vm288_vm1, %v371_v16  ;;  %v372_v18 = vpack.c.bf16 %v406_v17, %v406_v17 }
  0xf7   : > { %292 = vst.msk [vmem:[%s172_s27 + $0xc] sm:$0xf] %vm288_vm1, %v374_v20 }
  0xf8   : > { %290 = vst.msk [vmem:[%s172_s27 + $0x4] sm:$0xf] %vm288_vm1, %v372_v18 }
  0xf9 PF: > { %s13_s12 = sadd.s32 1, %s413_s12  }
  0xfa   : > { %p10_p4 = scmp.ge.s32.totalorder %s13_s12, 4  }
  0xfc   :  { %12 = sbr.rel (!%p10_p4) target bundleno = 1 (0x1), region = 62 }

</bundles_post_ra>
